<compile_context>
chip_gen: v5e
topology: v5e:2x2
jax: 0.10.0
libtpu: 0.0.40
codegen_flags: <defaults>
</compile_context>

<pallas_src>
import jax
import jax.numpy as jnp
from jax.experimental import pallas as pl
from jax.experimental.pallas import tpu as pltpu

_MAX_TILE_N = 4096


def _round_up(x, m):
    return ((x + m - 1) // m) * m


def _tpu_info():
    """(vmem_capacity_bytes, mxu_depth, num_tensorcores) with safe fallbacks."""
    kind = ""
    try:
        kind = jax.devices()[0].device_kind.lower()
    except Exception:
        pass

    vmem_cap = None
    try:
        vmem_cap = int(pltpu.get_tpu_info().vmem_capacity_bytes)
    except Exception:
        vmem_cap = None
    if vmem_cap is None or vmem_cap <= 0:
        # v5e/v6e: 128 MiB VMEM per TensorCore; v7x (and unknown): 64 MiB.
        vmem_cap = (128 if ("v5" in kind or "v6" in kind) else 64) * 1024 * 1024

    mxu_depth = 128 if "v5" in kind else 256          # v5e MXU is 128-deep
    num_tc = 2 if ("v7" in kind or "7x" in kind) else 1  # v7x: 2 TCs per chip
    return vmem_cap, mxu_depth, num_tc


def _nf_kernel_concat(sub_ref, obj_ref, subn_ref, objn_ref, w_ref, b_ref, o_ref):
    """H < MXU depth: build the K=4H LHS as a value (vregs) -> one dot."""
    lhs = jnp.concatenate(
        [sub_ref[...], obj_ref[...], subn_ref[...], objn_ref[...]], axis=-1
    ).astype(w_ref.dtype)
    acc = jnp.dot(lhs, w_ref[...], preferred_element_type=jnp.float32)
    # Fused epilogue: bias + ReLU + cast, all in f32 on the VPU.
    o_ref[...] = jnp.maximum(acc + b_ref[...], 0.0).astype(o_ref.dtype)


def _nf_kernel_4dot(sub_ref, obj_ref, subn_ref, objn_ref, w_ref, b_ref, o_ref):
    """H >= MXU depth: four accumulating dots against row-slices of W."""
    h = o_ref.shape[-1]
    mxu = w_ref.dtype
    acc = jnp.dot(sub_ref[...].astype(mxu), w_ref[0 * h:1 * h, :],
                  preferred_element_type=jnp.float32)
    acc += jnp.dot(obj_ref[...].astype(mxu), w_ref[1 * h:2 * h, :],
                   preferred_element_type=jnp.float32)
    acc += jnp.dot(subn_ref[...].astype(mxu), w_ref[2 * h:3 * h, :],
                   preferred_element_type=jnp.float32)
    acc += jnp.dot(objn_ref[...].astype(mxu), w_ref[3 * h:4 * h, :],
                   preferred_element_type=jnp.float32)
    o_ref[...] = jnp.maximum(acc + b_ref[...], 0.0).astype(o_ref.dtype)


def _pick_tile_n(n, h, in_bytes, out_bytes, mxu_bytes, fuse_concat,
                 vmem_budget, num_tc, align):
    """Row-tile size from the generation-aware VMEM budget."""
    # Resident operands: budget 2 buffers for W / b (worst case).
    resident = 2 * (4 * h) * h * mxu_bytes + 2 * h * 4
    avail = max(vmem_budget - resident, 1 << 20)

    per_row = (2 * 4 * h * in_bytes        # 4 streamed inputs, double-buffered
               + 2 * h * out_bytes         # output, double-buffered
               + h * 4                     # f32 accumulator / pre-epilogue
               + (4 * h * mxu_bytes if fuse_concat else 0))  # vreg-concat headroom

    tile = int(avail // per_row)
    tile = max(align, min(tile, _MAX_TILE_N))
    tile = (tile // align) * align

    if tile >= n:
        tile = n  # single full-extent tile (always layout-legal)
        if num_tc >= 2 and n >= 2 * align:
            # v7x only: keep >= 2 row-tiles so both TensorCores get work.
            tile = max(align, _round_up(-(-n // 2), align))
    return tile


def nf_op(sub_emb, obj_emb, sub_node_emb, obj_node_emb, w, b,
          *, tile_n=None, use_bf16_mxu=False):
    """ReLU(concat([sub, obj, subNode, objNode], -1) @ W + b) as a Pallas call."""
    n, h = sub_emb.shape
    for name, x in (("obj_emb", obj_emb), ("sub_node_emb", sub_node_emb),
                    ("obj_node_emb", obj_node_emb)):
        if x.shape != (n, h):
            raise ValueError(f"{name} shape {x.shape} != sub_emb shape {(n, h)}")
        if x.dtype != sub_emb.dtype:
            raise ValueError(f"{name} dtype {x.dtype} != sub_emb dtype {sub_emb.dtype}")
    if w.shape != (4 * h, h):
        raise ValueError(f"w shape {w.shape} != {(4 * h, h)}")
    if b.shape != (h,):
        raise ValueError(f"b shape {b.shape} != {(h,)}")

    in_dtype = sub_emb.dtype
    # bf16 MXU operands are an explicit opt-in: keeps f32 results bit-comparable
    # to the reference by default.
    mxu_dtype = (jnp.bfloat16
                 if (use_bf16_mxu and in_dtype == jnp.float32) else in_dtype)
    w_mxu = w if w.dtype == mxu_dtype else w.astype(mxu_dtype)
    b_f32 = b.astype(jnp.float32).reshape(1, h)

    in_bytes = jnp.dtype(in_dtype).itemsize
    mxu_bytes = jnp.dtype(mxu_dtype).itemsize
    out_bytes = in_bytes

    vmem_cap, mxu_depth, num_tc = _tpu_info()
    # ~70% of chip VMEM, capped at 100 MiB (v5e/v6e ~90 MiB, v7x ~45 MiB).
    vmem_budget = min(int(0.70 * vmem_cap), 100 * 1024 * 1024)

    # Fuse to K=4H only when K=H under-fills the MXU contraction depth.
    fuse_concat = h < mxu_depth

    align = 16 if in_bytes == 2 else 8
    if tile_n is None:
        tile_n = _pick_tile_n(n, h, in_bytes, out_bytes, mxu_bytes, fuse_concat,
                              vmem_budget, num_tc, align)
    else:
        tile_n = min(int(tile_n), n)
        if tile_n != n:
            tile_n = max(align, (tile_n // align) * align)

    # Ragged last block is fine: per-row op (no cross-row reduction), so OOB
    # reads are harmless and OOB writes are masked.  No wrapper-side padding.
    grid = (pl.cdiv(n, tile_n),)

    emb_spec = pl.BlockSpec((tile_n, h), lambda i: (i, 0))
    w_spec = pl.BlockSpec((4 * h, h), lambda i: (0, 0))    # resident
    b_spec = pl.BlockSpec((1, h), lambda i: (0, 0))        # resident
    out_spec = pl.BlockSpec((tile_n, h), lambda i: (i, 0))

    # VMEM estimate: resident W/b (2 buffers worst case), streamed inputs and
    # output (double-buffered), the f32 accumulator / pre-epilogue temporary,
    # the value-concat headroom (concat path only), plus 2 MiB slack.
    vmem_est = (2 * (4 * h) * h * mxu_bytes
                + 2 * h * 4
                + 2 * 4 * tile_n * h * in_bytes
                + 2 * tile_n * h * out_bytes
                + tile_n * h * 4
                + (tile_n * 4 * h * mxu_bytes if fuse_concat else 0)
                + (2 << 20))
    vmem_limit = int(min(max(32 * 1024 * 1024, vmem_est),
                         max(32 * 1024 * 1024, vmem_cap - 16 * 1024 * 1024)))

    kernel = _nf_kernel_concat if fuse_concat else _nf_kernel_4dot

    call = pl.pallas_call(
        kernel,
        out_shape=jax.ShapeDtypeStruct((n, h), in_dtype),
        grid_spec=pltpu.PrefetchScalarGridSpec(
            num_scalar_prefetch=0,
            grid=grid,
            in_specs=[emb_spec, emb_spec, emb_spec, emb_spec, w_spec, b_spec],
            out_specs=out_spec,
        ),
        compiler_params=pltpu.CompilerParams(
            dimension_semantics=("parallel",),
            vmem_limit_bytes=vmem_limit),
    )
    return call(sub_emb, obj_emb, sub_node_emb, obj_node_emb, w_mxu, b_f32)


def nf_op_reference(sub_emb, obj_emb, sub_node_emb, obj_node_emb, w, b):
    """Plain-JAX reference of the concat-MLP node-fusion op."""
    cat = jnp.concatenate([sub_emb, obj_emb, sub_node_emb, obj_node_emb], axis=-1)
    return jax.nn.relu(cat @ w + b)


if __name__ == "__main__":
    key = jax.random.PRNGKey(0)
    n = 8            # number of (sub, obj) pairs
    hidden = 32      # hidden_dim of NfOp

    ks = jax.random.split(key, 6)
    sub_emb = jax.random.normal(ks[0], (n, hidden), dtype=jnp.float32)
    obj_emb = jax.random.normal(ks[1], (n, hidden), dtype=jnp.float32)
    sub_node = jax.random.normal(ks[2], (n, hidden), dtype=jnp.float32)
    obj_node = jax.random.normal(ks[3], (n, hidden), dtype=jnp.float32)

    # Deterministic synthetic parameters (Glorot-ish scaling).
    w = jax.random.normal(ks[4], (4 * hidden, hidden), dtype=jnp.float32)
    w = w * (1.0 / jnp.sqrt(4.0 * hidden))
    bias = jax.random.normal(ks[5], (hidden,), dtype=jnp.float32) * 0.01

    out = nf_op(sub_emb, obj_emb, sub_node, obj_node, w, bias)
    out = jax.block_until_ready(out)

    ref = nf_op_reference(sub_emb, obj_emb, sub_node, obj_node, w, bias)
    assert out.shape == (n, hidden)
    assert jnp.allclose(out, ref, atol=1e-5, rtol=1e-5), "mismatch vs reference"

    print("KERNEL_OK")
</pallas_src>

<mosaic_0001>
module attributes {stable_mosaic.version = 11 : i64} {
  func.func @_nf_kernel_concat(%arg0: i32, %arg1: memref<8x32xf32, #tpu.memory_space<vmem>>, %arg2: memref<8x32xf32, #tpu.memory_space<vmem>>, %arg3: memref<8x32xf32, #tpu.memory_space<vmem>>, %arg4: memref<8x32xf32, #tpu.memory_space<vmem>>, %arg5: memref<128x32xf32, #tpu.memory_space<vmem>>, %arg6: memref<1x32xf32, #tpu.memory_space<vmem>>, %arg7: memref<8x32xf32, #tpu.memory_space<vmem>>) attributes {dimension_semantics = [#tpu.dimension_semantics<parallel>], iteration_bounds = array<i64: 1>, scalar_prefetch = 0 : i64, scratch_operands = 0 : i64, tpu.core_type = #tpu.core_type<tc>, window_params = [{transform_indices = @transform_0, window_bounds = array<i64: 8, 32>}, {transform_indices = @transform_1, window_bounds = array<i64: 8, 32>}, {transform_indices = @transform_2, window_bounds = array<i64: 8, 32>}, {transform_indices = @transform_3, window_bounds = array<i64: 8, 32>}, {pipeline_mode = #tpu.pipeline_mode<synchronous>, transform_indices = @transform_4, window_bounds = array<i64: 128, 32>}, {pipeline_mode = #tpu.pipeline_mode<synchronous>, transform_indices = @transform_5, window_bounds = array<i64: 1, 32>}, {transform_indices = @transform_6, window_bounds = array<i64: 8, 32>}]} {
    %c0 = arith.constant 0 : index
    %c0_0 = arith.constant 0 : index
    %0 = vector.load %arg1[%c0, %c0_0] : memref<8x32xf32, #tpu.memory_space<vmem>>, vector<8x32xf32>
    %c0_1 = arith.constant 0 : index
    %c0_2 = arith.constant 0 : index
    %1 = vector.load %arg2[%c0_1, %c0_2] : memref<8x32xf32, #tpu.memory_space<vmem>>, vector<8x32xf32>
    %c0_3 = arith.constant 0 : index
    %c0_4 = arith.constant 0 : index
    %2 = vector.load %arg3[%c0_3, %c0_4] : memref<8x32xf32, #tpu.memory_space<vmem>>, vector<8x32xf32>
    %c0_5 = arith.constant 0 : index
    %c0_6 = arith.constant 0 : index
    %3 = vector.load %arg4[%c0_5, %c0_6] : memref<8x32xf32, #tpu.memory_space<vmem>>, vector<8x32xf32>
    %4 = tpu.concatenate %0, %1, %2, %3 in 1 : vector<8x32xf32>, vector<8x32xf32>, vector<8x32xf32>, vector<8x32xf32> -> vector<8x128xf32>
    %c0_7 = arith.constant 0 : index
    %c0_8 = arith.constant 0 : index
    %5 = vector.load %arg5[%c0_7, %c0_8] : memref<128x32xf32, #tpu.memory_space<vmem>>, vector<128x32xf32>
    %cst = arith.constant dense<0.000000e+00> : vector<8x32xf32>
    %6 = tpu.matmul %4, %5, %cst {dimension_numbers = #tpu.dot_dimension_numbers<[1], [0], [0], [1], [0, 0, 1, 1], [], []>} : vector<8x128xf32>, vector<128x32xf32>, vector<8x32xf32> -> vector<8x32xf32>
    %c0_9 = arith.constant 0 : index
    %c0_10 = arith.constant 0 : index
    %7 = vector.load %arg6[%c0_9, %c0_10] : memref<1x32xf32, #tpu.memory_space<vmem>>, vector<1x32xf32>
    %8 = vector.broadcast %7 : vector<1x32xf32> to vector<8x32xf32>
    %9 = arith.addf %6, %8 : vector<8x32xf32>
    %cst_11 = arith.constant 0.000000e+00 : f32
    %10 = vector.broadcast %cst_11 : f32 to vector<8x32xf32>
    %11 = arith.maximumf %9, %10 : vector<8x32xf32>
    %c0_12 = arith.constant 0 : index
    %c0_13 = arith.constant 0 : index
    %12 = vector.load %arg7[%c0_12, %c0_13] : memref<8x32xf32, #tpu.memory_space<vmem>>, vector<8x32xf32>
    tpu.vector_store %arg7[%c0_12, %c0_13], %11 {strides = array<i32>} : memref<8x32xf32, #tpu.memory_space<vmem>>, vector<8x32xf32>,
    return
  }
  func.func @transform_0(%arg0: i32) -> (i32, i32) {
    %c0_i32 = arith.constant 0 : i32
    %c0_i32_0 = arith.constant 0 : i32
    return %arg0, %c0_i32 : i32, i32
  }
  func.func @transform_1(%arg0: i32) -> (i32, i32) {
    %c0_i32 = arith.constant 0 : i32
    %c0_i32_0 = arith.constant 0 : i32
    return %arg0, %c0_i32 : i32, i32
  }
  func.func @transform_2(%arg0: i32) -> (i32, i32) {
    %c0_i32 = arith.constant 0 : i32
    %c0_i32_0 = arith.constant 0 : i32
    return %arg0, %c0_i32 : i32, i32
  }
  func.func @transform_3(%arg0: i32) -> (i32, i32) {
    %c0_i32 = arith.constant 0 : i32
    %c0_i32_0 = arith.constant 0 : i32
    return %arg0, %c0_i32 : i32, i32
  }
  func.func @transform_4(%arg0: i32) -> (i32, i32) {
    %c0_i32 = arith.constant 0 : i32
    %c0_i32_0 = arith.constant 0 : i32
    %c0_i32_1 = arith.constant 0 : i32
    return %c0_i32, %c0_i32_0 : i32, i32
  }
  func.func @transform_5(%arg0: i32) -> (i32, i32) {
    %c0_i32 = arith.constant 0 : i32
    %c0_i32_0 = arith.constant 0 : i32
    %c0_i32_1 = arith.constant 0 : i32
    return %c0_i32, %c0_i32_0 : i32, i32
  }
  func.func @transform_6(%arg0: i32) -> (i32, i32) {
    %c0_i32 = arith.constant 0 : i32
    %c0_i32_0 = arith.constant 0 : i32
    return %arg0, %c0_i32 : i32, i32
  }
}

</mosaic_0001>

<bundles_post_ra>
// kernel: tpu_custom_call.1
= control target key start
LH: loop header
LB: loop body
LE: loop exit
PB: predicated region body
PF: predicated region fallthrough
CT: control target
= control target key end

     0   :  { %s135_s25 = smov 32   ;;  %s136_s30 = smov 96   ;;  %s242_s0 = inlined_call_operand.vmem [shape: f32[8,32], index: 0, kind: input, shape index: {}]   ;;  %s243_s1 = inlined_call_operand.vmem [shape: f32[8,32], index: 1, kind: input, shape index: {}]   ;;  %s244_s2 = inlined_call_operand.vmem [shape: f32[8,32], index: 2, kind: input, shape index: {}]   ;;  %s245_s3 = inlined_call_operand.vmem [shape: f32[8,32], index: 3, kind: input, shape index: {}]   ;;  %s246_s4 = inlined_call_operand.vmem [shape: f32[128,32], index: 4, kind: input, shape index: {}]   ;;  %s247_s5 = inlined_call_operand.vmem [shape: f32[1,32], index: 5, kind: input, shape index: {}]   ;;  %s248_s6 = inlined_call_operand.hbm [shape: f32[8,32], index: 6, kind: output, shape index: {}]  }
   0x1   :  { %v25_v0 = vld [vmem:[%s243_s1] sm:$0xff]  ;;  %v61_v2 = vld [vmem:[%s246_s4 + $0x78] sm:$0xff]  ;;  %v60_v3 = vld [vmem:[%s246_s4 + $0x70] sm:$0xff] }
   0x2   :  { %v27_v1 = vld [vmem:[%s245_s3] sm:$0xff]  ;;  %29 = vrot.lane.b32.xlu0 %v25_v0, %s135_s25  ;;  %66 = vmatpush.msra.mxu0 %v61_v2  ;;  %v59_v4 = vld [vmem:[%s246_s4 + $0x68] sm:$0xff] }
   0x3   :  { %37 = vrot.lane.b32.xlu1 %v27_v1, %s136_s30  ;;  %v58_v5 = vld [vmem:[%s246_s4 + $0x60] sm:$0xff] }
   0x4   :  { %67 = vmatpush.msra.mxu0 %v60_v3 }
   0x5   :  { %11 = vsyncpa [#allocation3], 0  ;;  %v26_v6 = vld [vmem:[%s244_s2] sm:$0xff]  ;;  %v57_v7 = vld [vmem:[%s246_s4 + $0x58] sm:$0xff]  ;;  %s137_s13 = smov 64   ;;  %vm40_vm0 = vcmask 261120  }
   0x6   :  { %68 = vmatpush.msra.mxu0 %v59_v4  ;;  %v56_v8 = vld [vmem:[%s246_s4 + $0x50] sm:$0xff]  ;;  %v55_v9 = vld [vmem:[%s246_s4 + $0x48] sm:$0xff]  ;;  %v54_v10 = vld [vmem:[%s246_s4 + $0x40] sm:$0xff]  ;;  %vm42_vm1 = vcmask 523264   ;;  %vm44_vm2 = vcmask 785408  }
   0x7   :  { %v53_v11 = vld [vmem:[%s246_s4 + $0x38] sm:$0xff]  ;;  %v52_v12 = vld [vmem:[%s246_s4 + $0x30] sm:$0xff]  ;;  %v51_v13 = vld [vmem:[%s246_s4 + $0x28] sm:$0xff] }
   0x8   :  { %69 = vmatpush.msra.mxu0 %v58_v5  ;;  %v50_v14 = vld [vmem:[%s246_s4 + $0x20] sm:$0xff]  ;;  %v49_v15 = vld [vmem:[%s246_s4 + $0x18] sm:$0xff]  ;;  %v48_v16 = vld [vmem:[%s246_s4 + $0x10] sm:$0xff] }
   0x9   :  { %v47_v17 = vld [vmem:[%s246_s4 + $0x8] sm:$0xff]  ;;  %v46_v18 = vld [vmem:[%s246_s4] sm:$0xff]  ;;  %s138_s4 = smov [#allocation2]  }
   0xa   :  { %33 = vrot.lane.b32.xlu0 %v26_v6, %s137_s13  ;;  %70 = vmatpush.msra.mxu0 %v57_v7  ;;  %v24_v20 = vld [vmem:[%s242_s0] sm:$0xff]  ;;  %s93_s13 = sshll.u32 %s138_s4, 4  ;;  %s95_s0 = sshll.u32 %s248_s6, 4  ;;  %s94_s13 = int_to_ptr.vmem [resolvable:$true] %s93_s13  ;;  %s96_s0 = int_to_ptr.hbm [resolvable:$true] %s95_s0 }
   0xb   :  { %v108_v26 = vld [vmem:[%s247_s5] ss:$0 sm:$0xff] }
   0xc   :  { %71 = vmatpush.msra.mxu0 %v56_v8 }
   0xe   :  { %72 = vmatpush.msra.mxu0 %v55_v9 }
  0x10   :  { %73 = vmatpush.msra.mxu0 %v54_v10 }
  0x12   :  { %74 = vmatpush.msra.mxu0 %v53_v11 }
  0x14   :  { %75 = vmatpush.msra.mxu0 %v52_v12 }
  0x16   :  { %76 = vmatpush.msra.mxu0 %v51_v13 }
  0x18   :  { %77 = vmatpush.msra.mxu0 %v50_v14 }
  0x1a   :  { %78 = vmatpush.msra.mxu0 %v49_v15 }
  0x1c   :  { %79 = vmatpush.msra.mxu0 %v48_v16 }
  0x1e   :  { %80 = vmatpush.msra.mxu0 %v47_v17 }
  0x20   :  { %81 = vmatpush.msra.mxu0 %v46_v18 }
  0x74   :  { %v30_v19 = vpop.permute.xlu0 %29 }
  0x75   :  { %v38_v21 = vpop.permute.xlu1 %37  ;;  %v41_v22 = vsel %vm40_vm0, %v24_v20, %v30_v19 }
  0x7c   :  { %v34_v23 = vpop.permute.xlu0 %33 }
  0x7d   :  { %v43_v24 = vsel %vm42_vm1, %v41_v22, %v34_v23 }
  0x7e   :  { %v45_v25 = vsel %vm44_vm2, %v43_v24, %v38_v21 }
  0x7f   :  { %82 = vmatmul.f32.vlgmr.msra.gmra.mxu0 %v45_v25 }
  0xfc   :  { %v83_v27 = vpop.f32.mrf.mxu0 }
  0xfd   :  { %v84_v28 = vadd.f32 %v108_v26, %v83_v27 }
  0xff   :  { %v86_v29 = vmax.f32 %v84_v28, 0.0 }
 0x101   :  { %87 = vst.msk [vmem:[#allocation2] sm:$0xff] %vm40_vm0, %v86_v29 }
 0x102   :  { %98 = dma.vmem_to_hbm [thread:$0]  %s94_s13, 128, %s96_s0, [#allocation3]  }
 0x103   :  { %133 = dma.done.wait [#allocation3], 128  }
 0x104   :  { %134 = vsyncadd [#allocation3], 4294967168 }
 0x105   :  { %103 = vsyncpa [#allocation3], 1 }

</bundles_post_ra>
